<compile_context>
chip_gen: v6e
topology: v6e:2x2x1
jax: 0.10.0
libtpu: 0.0.40
codegen_flags: <defaults>
</compile_context>

<pallas_src>
import jax
import jax.numpy as jnp
from jax.experimental import pallas as pl
from jax.experimental.pallas import tpu as pltpu


def s16_to_u8_relu_kernel(x_ref, o_ref):
    # Collapsed fake-quant pipeline: clip(round_half_even(x), 0, 255).
    x = x_ref[...]
    o_ref[...] = jnp.clip(jnp.round(x), 0.0, 255.0).astype(o_ref.dtype)


def s16_to_u8_relu(x, *, lane=1024, tile_rows=512):
    """Elementwise S16->U8 fake-quant + relu for arbitrary-shaped float32 input."""
    orig_shape = x.shape
    orig_dtype = x.dtype
    n = x.size

    # For small inputs shrink the tile so padding overhead stays tiny while
    # still satisfying the (8, 128) lane/sublane tiling constraint.
    if n <= lane * tile_rows:
        lane = 128
        tile_rows = 8

    rows = pl.cdiv(n, lane)
    rows_padded = pl.cdiv(rows, tile_rows) * tile_rows
    total = rows_padded * lane

    x_flat = jnp.ravel(x)
    if total != n:
        x_flat = jnp.pad(x_flat, (0, total - n))
    x2d = x_flat.reshape(rows_padded, lane)

    grid = (rows_padded // tile_rows,)

    out2d = pl.pallas_call(
        s16_to_u8_relu_kernel,
        out_shape=jax.ShapeDtypeStruct((rows_padded, lane), orig_dtype),
        grid=grid,
        in_specs=[pl.BlockSpec((tile_rows, lane), lambda i: (i, 0))],
        out_specs=pl.BlockSpec((tile_rows, lane), lambda i: (i, 0)),
        compiler_params=pltpu.CompilerParams(
            dimension_semantics=("parallel",),
        ),
    )(x2d)

    return out2d.reshape(-1)[:n].reshape(orig_shape)


def _reference(x):
    # Full (un-collapsed) PyTorch pipeline in plain JAX, for verification.
    y = jnp.clip(jnp.round(x), -32768.0, 32767.0)   # fq int16
    y = jnp.maximum(y, 0.0)                          # relu
    y = jnp.clip(jnp.round(y), -32768.0, 32767.0)   # fq int16
    y = jnp.clip(jnp.round(y), 0.0, 255.0)          # fq uint8
    return y


if __name__ == "__main__":
    key = jax.random.PRNGKey(0)
    k1, k2 = jax.random.split(key)

    # Shape from the module's get_example_inputs: (3, 3); scaled so both the
    # relu (negatives) and the uint8 clamp (values > 255) are exercised.
    x_small = jax.random.normal(k1, (3, 3), dtype=jnp.float32) * 300.0

    # A larger, multi-tile input to exercise the grid/pipelining path.
    x_big = jax.random.normal(k2, (32, 160), dtype=jnp.float32) * 300.0

    ok = True
    for x in (x_small, x_big):
        out = s16_to_u8_relu(x)
        jax.block_until_ready(out)
        ref = _reference(x)
        if not jnp.allclose(out, ref):
            ok = False
            break

    assert ok, "mismatch vs reference"
    print("KERNEL_OK")
</pallas_src>

<mosaic_0001>
module attributes {stable_mosaic.version = 11 : i64} {
  func.func @s16_to_u8_relu_kernel(%arg0: i32, %arg1: memref<8x128xf32, #tpu.memory_space<vmem>>, %arg2: memref<8x128xf32, #tpu.memory_space<vmem>>) attributes {dimension_semantics = [#tpu.dimension_semantics<parallel>], iteration_bounds = array<i64: 1>, scalar_prefetch = 0 : i64, scratch_operands = 0 : i64, tpu.core_type = #tpu.core_type<tc>, window_params = [{transform_indices = @transform_0, window_bounds = array<i64: 8, 128>}, {transform_indices = @transform_1, window_bounds = array<i64: 8, 128>}]} {
    %c0 = arith.constant 0 : index
    %c0_0 = arith.constant 0 : index
    %0 = vector.load %arg1[%c0, %c0_0] : memref<8x128xf32, #tpu.memory_space<vmem>>, vector<8x128xf32>
    %1 = math.roundeven %0 : vector<8x128xf32>
    %cst = arith.constant 0.000000e+00 : f32
    %cst_1 = arith.constant 2.550000e+02 : f32
    %2 = vector.broadcast %cst : f32 to vector<8x128xf32>
    %3 = arith.maximumf %2, %1 : vector<8x128xf32>
    %4 = vector.broadcast %cst_1 : f32 to vector<8x128xf32>
    %5 = arith.minimumf %4, %3 : vector<8x128xf32>
    %c0_2 = arith.constant 0 : index
    %c0_3 = arith.constant 0 : index
    %6 = vector.load %arg2[%c0_2, %c0_3] : memref<8x128xf32, #tpu.memory_space<vmem>>, vector<8x128xf32>
    tpu.vector_store %arg2[%c0_2, %c0_3], %5 {strides = array<i32>} : memref<8x128xf32, #tpu.memory_space<vmem>>, vector<8x128xf32>,
    return
  }
  func.func @transform_0(%arg0: i32) -> (i32, i32) {
    %c0_i32 = arith.constant 0 : i32
    %c0_i32_0 = arith.constant 0 : i32
    return %arg0, %c0_i32 : i32, i32
  }
  func.func @transform_1(%arg0: i32) -> (i32, i32) {
    %c0_i32 = arith.constant 0 : i32
    %c0_i32_0 = arith.constant 0 : i32
    return %arg0, %c0_i32 : i32, i32
  }
}

</mosaic_0001>

<bundles_post_ra>
// kernel: tpu_custom_call.1
= control target key start
LH: loop header
LB: loop body
LE: loop exit
PB: predicated region body
PF: predicated region fallthrough
CT: control target
= control target key end

     0   :  { %6 = vsyncpa [#allocation3], 0  ;;  %s113_s0 = inlined_call_operand.hbm [shape: f32[8,128], index: 0, kind: input, shape index: {}]   ;;  %s114_s1 = inlined_call_operand.hbm [shape: f32[8,128], index: 1, kind: output, shape index: {}]  }
   0x1   :  { %7 = vsyncpa [#allocation4], 0  ;;  %s95_s6 = smov [#allocation2]  }
   0x2   :  { %s14_s7 = sshll.u32 %s95_s6, 4  ;;  %s15_s7 = int_to_ptr.vmem [resolvable:$true] %s14_s7 }
   0x3   :  { %s59_s8 = scalar_lea.vmem %s15_s7, 128  ;;  %p64_p1 = scmp.lt.s32.totalorder %s15_s7, %s15_s7 }
   0x4   :  { %p60_p0 = scmp.ne.s32.totalorder %s15_s7, %s59_s8  ;;  %p65_p2 = scmp.lt.s32.totalorder %s59_s8, %s59_s8 }
   0x6   :  { %p66_p3 = por %p65_p2, %p64_p1 }
   0x8   :  { %p67_p4 = pnand %p66_p3, %p60_p0 }
   0xa   :  { %70 = shalt.err (!%p67_p4)
}
   0xb   :  { %17 = dma.hbm_to_vmem [thread:$0]  %s113_s0, 128, %s15_s7, [#allocation3]  }
   0xc   :  { %91 = dma.done.wait [#allocation3], 128  }
   0xd   :  { %92 = vsyncadd [#allocation3], 4294967168  ;;  %v21_v0 = vld [vmem:[#allocation2] sm:$0xff]  ;;  %s96_s11 = smov [#allocation5]  }
   0xe   :  { %v43_v1 = vcvt.f32.s32 %v21_v0  ;;  %v41_v2 = vand.u32 2147483647, %v21_v0  ;;  %v46_v4 = vand.u32 2147483648, %v21_v0  ;;  %s32_s12 = sshll.u32 %s96_s11, 4  ;;  %s33_s12 = int_to_ptr.vmem [resolvable:$true] %s32_s12 }
   0xf   :  { %s71_s13 = scalar_lea.vmem %s33_s12, 128  ;;  %p76_p6 = scmp.lt.s32.totalorder %s33_s12, %s33_s12 }
  0x10   :  { %v44_v3 = vcvt.s32.f32 %v43_v1  ;;  %vm42_vm0 = vcmp.lt.f32.partialorder %v41_v2, 8388608.0  ;;  %p72_p5 = scmp.ne.s32.totalorder %s33_s12, %s71_s13  ;;  %p77_p7 = scmp.lt.s32.totalorder %s71_s13, %s71_s13 }
  0x12   :  { %v45_v5 = vand.u32 2147483647, %v44_v3  ;;  %p78_p8 = por %p77_p7, %p76_p6 }
  0x14   :  { %v47_v6 = vor.u32 %v46_v4, %v45_v5  ;;  %p79_p9 = pnand %p78_p8, %p72_p5 }
  0x16   :  { %v48_v7 = vsel %vm42_vm0, %v47_v6, %v21_v0 }
  0x17   :  { %v23_v8 = vmax.f32 %v48_v7, 0.0 }
  0x19   :  { %v24_v9 = vmin.f32 %v23_v8, 255.0 }
  0x1b   :  { %25 = vst [vmem:[#allocation5] sm:$0xff] %v24_v9 }
  0x1c   :  { %82 = shalt.err (!%p79_p9)
}
  0x1d   :  { %35 = dma.vmem_to_hbm [thread:$0]  %s33_s12, 128, %s114_s1, [#allocation4]  }
  0x1e   :  { %93 = dma.done.wait [#allocation4], 128  }
  0x1f   :  { %94 = vsyncadd [#allocation4], 4294967168 }
  0x20   :  { %39 = vsyncpa [#allocation3], 1 }
  0x21   :  { %40 = vsyncpa [#allocation4], 1 }

</bundles_post_ra>
